<compile_context>
chip_gen: v7x
topology: tpu7x:2x2x1
jax: 0.10.0
libtpu: 0.0.40
codegen_flags: <defaults>
</compile_context>

<pallas_src>
import functools

import jax
import jax.numpy as jnp
from jax.experimental import pallas as pl
from jax.experimental.pallas import tpu as pltpu


_LANE = 128


def _round_up(x: int, m: int) -> int:
    return -(-x // m) * m


@functools.lru_cache(maxsize=None)
def _tpu_budgets():
    """Returns (vmem_limit_bytes, block_budget_elems, min_grid_steps)."""
    try:
        vmem_cap = pltpu.get_tpu_info().vmem_capacity_bytes
    except Exception:
        vmem_cap = 64 * 1024 * 1024                      # assume v7x-like
    if vmem_cap >= 100 * 1024 * 1024:                    # v5e / v6e: 128 MiB
        return 96 * 1024 * 1024, 2 << 20, 1              # ~8 MiB f32 tiles
    # v7x: 64 MiB per TC, 2 TensorCores -> smaller tiles, longer grid.
    return 48 * 1024 * 1024, 1 << 20, 8                  # ~4 MiB f32 tiles


def _min_sublane(dtype) -> int:
    # Sub-32-bit dtypes pack along sublanes: 8 for f32, 16 for bf16, 32 int8.
    itemsize = jnp.dtype(dtype).itemsize
    return 8 * max(1, 4 // itemsize)


def _softmax_math(x, axis, n_features, eps):
    """SafeSoftmax on an f32 tile; reductions along `axis`."""
    m = jnp.max(x, axis=axis, keepdims=True)
    e_x = jnp.exp(x - m)
    s = jnp.sum(e_x, axis=axis, keepdims=True)
    inv_s = 1.0 / s                         # exact; per-row vector only (cheap)
    p = e_x * inv_s + eps
    # Analytic second reduction: sum_j (e_x_j*inv_s + eps) == s*inv_s + n*eps.
    sp = s * inv_s + float(n_features) * eps
    return p * (1.0 / sp)                   # exact per-row recip + broadcast mul


def _rows_major_kernel(x_ref, o_ref, *, n_features, eps):
    # Layout (br, n), n >= 128: features ride the lane axis, reduce over lanes.
    x = x_ref[...].astype(jnp.float32)
    o_ref[...] = _softmax_math(x, -1, n_features, eps).astype(o_ref.dtype)


def _feature_major_kernel(x_ref, o_ref, *, n_features, eps):
    # Layout (bc, n), n < 128: read native, transpose on the XLU so rows ride
    # the lane axis (bc is a multiple of 128 -> dense vregs), reduce along
    # sublanes, transpose back and store in native layout.
    xt = x_ref[...].astype(jnp.float32).T            # (n, bc)
    out_t = _softmax_math(xt, 0, n_features, eps)
    o_ref[...] = out_t.T.astype(o_ref.dtype)


def _run_rows_major(x2d: jax.Array, eps: float) -> jax.Array:
    rows, n = x2d.shape
    vmem_limit, budget, min_steps = _tpu_budgets()
    min_sub = _min_sublane(x2d.dtype)
    padded_n = _round_up(n, _LANE)                    # lane padding in VMEM
    br = max(min_sub, (budget // padded_n) // min_sub * min_sub)
    if min_steps > 1:                                 # feed both v7x TCs
        br = min(br, max(min_sub, _round_up(pl.cdiv(rows, min_steps), min_sub)))
    br = min(br, _round_up(rows, min_sub))
    grid = (pl.cdiv(rows, br),)

    return pl.pallas_call(
        functools.partial(_rows_major_kernel, n_features=n, eps=eps),
        out_shape=jax.ShapeDtypeStruct((rows, n), x2d.dtype),
        grid_spec=pltpu.PrefetchScalarGridSpec(
            num_scalar_prefetch=0,
            grid=grid,
            in_specs=[pl.BlockSpec((br, n), lambda i: (i, 0))],
            out_specs=pl.BlockSpec((br, n), lambda i: (i, 0)),
        ),
        compiler_params=pltpu.CompilerParams(
            dimension_semantics=("parallel",),
            vmem_limit_bytes=vmem_limit),
    )(x2d)


def _run_feature_major(x2d: jax.Array, eps: float) -> jax.Array:
    rows, n = x2d.shape
    vmem_limit, budget, min_steps = _tpu_budgets()
    # Budget in lane-PADDED elements: a (bc, n<128) f32 block still occupies
    # bc * 128 lanes worth of VMEM per (8,128) tile.
    bc = max(_LANE, (budget // _LANE) // _LANE * _LANE)
    if min_steps > 1:
        bc = min(bc, max(_LANE, _round_up(pl.cdiv(rows, min_steps), _LANE)))
    bc = min(bc, _round_up(rows, _LANE))
    grid = (pl.cdiv(rows, bc),)

    return pl.pallas_call(
        functools.partial(_feature_major_kernel, n_features=n, eps=eps),
        out_shape=jax.ShapeDtypeStruct((rows, n), x2d.dtype),
        grid_spec=pltpu.PrefetchScalarGridSpec(
            num_scalar_prefetch=0,
            grid=grid,
            in_specs=[pl.BlockSpec((bc, n), lambda i: (i, 0))],
            out_specs=pl.BlockSpec((bc, n), lambda i: (i, 0)),
        ),
        compiler_params=pltpu.CompilerParams(
            dimension_semantics=("parallel",),
            vmem_limit_bytes=vmem_limit),
    )(x2d)


def _xla_safe_softmax(x, axis, eps):
    # Guard path for vocab-scale feature dims that would blow VMEM.
    # TODO(synk): replace with a two-pass / online-softmax Pallas kernel
    # (feature-dim grid axis marked "arbitrary", running max/sum in scratch,
    # finalize with pl.when) instead of this XLA fallback.
    x32 = x.astype(jnp.float32)
    e_x = jnp.exp(x32 - jnp.max(x32, axis=axis, keepdims=True))
    p = e_x / jnp.sum(e_x, axis=axis, keepdims=True) + eps
    return (p / jnp.sum(p, axis=axis, keepdims=True)).astype(x.dtype)


def safe_softmax(x: jax.Array, axis: int = -1, eps: float = 1e-5) -> jax.Array:
    """SafeSoftmax forward. Softmax axis moved to the back, leading dims
    flattened, then dispatched to a lane-dense Pallas layout."""
    ndim = x.ndim
    axis = axis % ndim
    perm = None
    if axis != ndim - 1:
        perm = tuple(i for i in range(ndim) if i != axis) + (axis,)
        x = jnp.transpose(x, perm)

    shape = x.shape
    n = shape[-1]
    rows = 1
    for d in shape[:-1]:
        rows *= d

    vmem_limit, _, _ = _tpu_budgets()
    min_block_bytes = _min_sublane(x.dtype) * _round_up(n, _LANE) * 4
    if min_block_bytes * 8 > vmem_limit:
        out = _xla_safe_softmax(x, -1, eps)
    else:
        x2d = x.reshape(rows, n)
        if n >= _LANE:
            out2d = _run_rows_major(x2d, eps)
        else:
            out2d = _run_feature_major(x2d, eps)
        out = out2d.reshape(shape)

    if perm is not None:
        inv = [0] * ndim
        for i, ax in enumerate(perm):
            inv[ax] = i
        out = jnp.transpose(out, inv)
    return out


def _reference_safe_softmax(x, axis=-1, eps=1e-5):
    x = x.astype(jnp.float32)
    e_x = jnp.exp(x - jnp.max(x, axis=axis, keepdims=True))
    p = e_x / jnp.sum(e_x, axis=axis, keepdims=True) + eps
    return p / jnp.sum(p, axis=axis, keepdims=True)


if __name__ == "__main__":
    key = jax.random.PRNGKey(0)

    # NCHW-style input (feature-major path: n = 16 < 128).
    x = jax.random.normal(key, (2, 4, 16, 16), dtype=jnp.float32)
    out = jax.block_until_ready(safe_softmax(x, axis=-1, eps=1e-5))
    ref = _reference_safe_softmax(x, axis=-1, eps=1e-5)
    assert out.shape == x.shape
    assert jnp.allclose(out, ref, atol=1e-5, rtol=1e-5)
    assert jnp.allclose(jnp.sum(out, axis=-1), 1.0, atol=1e-5)

    # Non-last softmax axis (exercises the wrapper transpose; n = 4).
    out_ax1 = jax.block_until_ready(safe_softmax(x, axis=1, eps=1e-5))
    ref_ax1 = _reference_safe_softmax(x, axis=1, eps=1e-5)
    assert jnp.allclose(out_ax1, ref_ax1, atol=1e-5, rtol=1e-5)

    # Lane-dense rows-major path (n = 160 >= 128) with a ragged row count
    # (exercises the cdiv grid + masked partial last block, no padding pass).
    x2 = jax.random.normal(jax.random.PRNGKey(1), (2, 3, 5, 160),
                           dtype=jnp.float32)
    out2 = jax.block_until_ready(safe_softmax(x2, axis=-1, eps=1e-5))
    ref2 = _reference_safe_softmax(x2, axis=-1, eps=1e-5)
    assert jnp.allclose(out2, ref2, atol=1e-5, rtol=1e-5)
    assert jnp.allclose(jnp.sum(out2, axis=-1), 1.0, atol=1e-5)

    print("KERNEL_OK")
</pallas_src>

<mosaic_0001>
module attributes {stable_mosaic.version = 11 : i64} {
  func.func @_feature_major_kernel(%arg0: i32, %arg1: memref<128x16xf32, #tpu.memory_space<vmem>>, %arg2: memref<128x16xf32, #tpu.memory_space<vmem>>) attributes {dimension_semantics = [#tpu.dimension_semantics<parallel>], iteration_bounds = array<i64: 1>, scalar_prefetch = 0 : i64, scratch_operands = 0 : i64, tpu.core_type = #tpu.core_type<tc>, window_params = [{transform_indices = @transform_0, window_bounds = array<i64: 128, 16>}, {transform_indices = @transform_1, window_bounds = array<i64: 128, 16>}]} {
    %c0 = arith.constant 0 : index
    %c0_0 = arith.constant 0 : index
    %0 = vector.load %arg1[%c0, %c0_0] : memref<128x16xf32, #tpu.memory_space<vmem>>, vector<128x16xf32>
    %1 = tpu.transpose %0, [1, 0] : vector<128x16xf32> -> vector<16x128xf32>
    %cst = arith.constant dense<0xFF800000> : vector<128xf32>
    %2 = vector.multi_reduction <maximumf>, %1, %cst [0] : vector<16x128xf32> to vector<128xf32>
    %3 = vector.shape_cast %2 : vector<128xf32> to vector<1x128xf32>
    %4 = vector.broadcast %3 : vector<1x128xf32> to vector<16x128xf32>
    %5 = arith.subf %1, %4 : vector<16x128xf32>
    %6 = math.exp %5 : vector<16x128xf32>
    %cst_1 = arith.constant dense<0.000000e+00> : vector<128xf32>
    %7 = vector.multi_reduction <add>, %6, %cst_1 [0] : vector<16x128xf32> to vector<128xf32>
    %8 = vector.shape_cast %7 : vector<128xf32> to vector<1x128xf32>
    %cst_2 = arith.constant 1.000000e+00 : f32
    %9 = vector.broadcast %cst_2 : f32 to vector<1x128xf32>
    %10 = arith.divf %9, %8 : vector<1x128xf32>
    %11 = vector.broadcast %10 : vector<1x128xf32> to vector<16x128xf32>
    %12 = arith.mulf %6, %11 : vector<16x128xf32>
    %cst_3 = arith.constant 9.99999974E-6 : f32
    %13 = vector.broadcast %cst_3 : f32 to vector<16x128xf32>
    %14 = arith.addf %12, %13 : vector<16x128xf32>
    %15 = arith.mulf %8, %10 : vector<1x128xf32>
    %cst_4 = arith.constant 1.600000e-04 : f32
    %16 = vector.broadcast %cst_4 : f32 to vector<1x128xf32>
    %17 = arith.addf %15, %16 : vector<1x128xf32>
    %cst_5 = arith.constant 1.000000e+00 : f32
    %18 = vector.broadcast %cst_5 : f32 to vector<1x128xf32>
    %19 = arith.divf %18, %17 : vector<1x128xf32>
    %20 = vector.broadcast %19 : vector<1x128xf32> to vector<16x128xf32>
    %21 = arith.mulf %14, %20 : vector<16x128xf32>
    %22 = tpu.transpose %21, [1, 0] : vector<16x128xf32> -> vector<128x16xf32>
    %c0_6 = arith.constant 0 : index
    %c0_7 = arith.constant 0 : index
    %23 = vector.load %arg2[%c0_6, %c0_7] : memref<128x16xf32, #tpu.memory_space<vmem>>, vector<128x16xf32>
    tpu.vector_store %arg2[%c0_6, %c0_7], %22 {strides = array<i32>} : memref<128x16xf32, #tpu.memory_space<vmem>>, vector<128x16xf32>,
    return
  }
  func.func @transform_0(%arg0: i32) -> (i32, i32) {
    %c0_i32 = arith.constant 0 : i32
    %c0_i32_0 = arith.constant 0 : i32
    return %arg0, %c0_i32 : i32, i32
  }
  func.func @transform_1(%arg0: i32) -> (i32, i32) {
    %c0_i32 = arith.constant 0 : i32
    %c0_i32_0 = arith.constant 0 : i32
    return %arg0, %c0_i32 : i32, i32
  }
}

</mosaic_0001>

<bundles_post_ra>
// kernel: tpu_custom_call.1
= control target key start
LH: loop header
LB: loop body
LE: loop exit
PB: predicated region body
PF: predicated region fallthrough
CT: control target
= control target key end

     0   :  { %vm120_vm0 = vcmask 130048   ;;  %s272_s0 = inlined_call_operand.vmem [shape: f32[128,16], index: 0, kind: input, shape index: {}]   ;;  %s273_s1 = inlined_call_operand.vmem [shape: f32[128,16], index: 1, kind: output, shape index: {}]  }
   0x1   :  { %v8_v0 = vld [vmem:[%s272_s0] sm:$0xff]  ;;  %v9_v1 = vld [vmem:[%s272_s0 + $0x8] sm:$0xff]  ;;  %v10_v2 = vld [vmem:[%s272_s0 + $0x10] sm:$0xff] }
   0x2   :  { %24 = vxpose.xlu0.b32.start [1/16] (narrow) %v8_v0, 16  ;;  %v11_v3 = vld [vmem:[%s272_s0 + $0x18] sm:$0xff]  ;;  %v12_v4 = vld [vmem:[%s272_s0 + $0x20] sm:$0xff]  ;;  %v13_v5 = vld [vmem:[%s272_s0 + $0x28] sm:$0xff] }
   0x3   :  { %v14_v6 = vld [vmem:[%s272_s0 + $0x30] sm:$0xff]  ;;  %v15_v7 = vld [vmem:[%s272_s0 + $0x38] sm:$0xff]  ;;  %v16_v8 = vld [vmem:[%s272_s0 + $0x40] sm:$0xff] }
   0x4   :  { %v17_v9 = vld [vmem:[%s272_s0 + $0x48] sm:$0xff]  ;;  %v18_v10 = vld [vmem:[%s272_s0 + $0x50] sm:$0xff]  ;;  %v19_v11 = vld [vmem:[%s272_s0 + $0x58] sm:$0xff] }
   0x5   :  { %v20_v12 = vld [vmem:[%s272_s0 + $0x60] sm:$0xff]  ;;  %v21_v13 = vld [vmem:[%s272_s0 + $0x68] sm:$0xff]  ;;  %v22_v14 = vld [vmem:[%s272_s0 + $0x70] sm:$0xff] }
   0x6   :  { %25 = vxpose.xlu0.b32.cont [2/16] (narrow) %v9_v1, 16  ;;  %v23_v15 = vld [vmem:[%s272_s0 + $0x78] sm:$0xff] }
   0xa   :  { %26 = vxpose.xlu0.b32.cont [3/16] (narrow) %v10_v2, 16 }
   0xe   :  { %27 = vxpose.xlu0.b32.cont [4/16] (narrow) %v11_v3, 16 }
  0x12   :  { %28 = vxpose.xlu0.b32.cont [5/16] (narrow) %v12_v4, 16 }
  0x16   :  { %29 = vxpose.xlu0.b32.cont [6/16] (narrow) %v13_v5, 16 }
  0x1a   :  { %30 = vxpose.xlu0.b32.cont [7/16] (narrow) %v14_v6, 16 }
  0x1e   :  { %31 = vxpose.xlu0.b32.cont [8/16] (narrow) %v15_v7, 16 }
  0x22   :  { %32 = vxpose.xlu0.b32.cont [9/16] (narrow) %v16_v8, 16 }
  0x26   :  { %33 = vxpose.xlu0.b32.cont [10/16] (narrow) %v17_v9, 16 }
  0x2a   :  { %34 = vxpose.xlu0.b32.cont [11/16] (narrow) %v18_v10, 16 }
  0x2e   :  { %35 = vxpose.xlu0.b32.cont [12/16] (narrow) %v19_v11, 16 }
  0x32   :  { %36 = vxpose.xlu0.b32.cont [13/16] (narrow) %v20_v12, 16 }
  0x36   :  { %37 = vxpose.xlu0.b32.cont [14/16] (narrow) %v21_v13, 16 }
  0x3a   :  { %38 = vxpose.xlu0.b32.cont [15/16] (narrow) %v22_v14, 16 }
  0x3e   :  { %39 = vxpose.xlu0.b32.end [16/16] (narrow) %v23_v15, 16 }
  0x82   :  { %v40_v16 = vpop.trf.xlu0 }
  0x86   :  { %v41_v17 = vpop.trf.xlu0 }
  0x87   :  { %v56_v18 = vmax.f32 %v40_v16, %v41_v17 }
  0x89   :  { %v57_v19 = vrot.slane %v56_v18, 4 }
  0x8b   :  { %v58_v20 = vmax.f32 %v56_v18, %v57_v19 }
  0x8d   :  { %v59_v21 = vrot.slane %v58_v20, 2 }
  0x8f   :  { %v60_v22 = vmax.f32 %v58_v20, %v59_v21 }
  0x91   :  { %v61_v23 = vrot.slane %v60_v22, 1 }
  0x93   :  { %v62_v24 = vmax.f32 %v60_v22, %v61_v23 }
  0x95   :  { %v63_v25 = vsub.f32 %v40_v16, %v62_v24  ;;  %v64_v26 = vsub.f32 %v41_v17, %v62_v24 }
  0x97   :  { %v65_v27 = vmul.f32 1.442695, %v63_v25  ;;  %v67_v28 = vmul.f32 1.442695, %v64_v26 }
  0x99   :  { %142 = vpow2.f32 %v65_v27 }
  0x9a   :  { %144 = vpow2.f32 %v67_v28 }
  0xa3   :  { %v143_v29 = vpop.eup %142 }
  0xa4   :  { %v145_v30 = vpop.eup %144 }
  0xa5   :  { %v69_v31 = vadd.f32 %v145_v30, %v143_v29 }
  0xa7   :  { %v70_v32 = vrot.slane %v69_v31, 4 }
  0xa9   :  { %v71_v33 = vadd.f32 %v70_v32, %v69_v31 }
  0xab   :  { %v72_v34 = vrot.slane %v71_v33, 2 }
  0xad   :  { %v73_v35 = vadd.f32 %v72_v34, %v71_v33 }
  0xaf   :  { %v74_v36 = vrot.slane %v73_v35, 1 }
  0xb1   :  { %v75_v37 = vadd.f32 %v74_v36, %v73_v35 }
  0xb3   :  { %146 = vrcp.f32 %v75_v37 }
  0xbd   :  { %v147_v38 = vpop.eup %146 }
  0xbe   :  { %v82_v39 = vmul.f32 %v147_v38, %v75_v37  ;;  %v78_v41 = vmul.f32 %v147_v38, %v143_v29  ;;  %v79_v43 = vmul.f32 %v147_v38, %v145_v30 }
  0xc0   :  { %v83_v40 = vadd.f32 0.00016, %v82_v39  ;;  %v80_v42 = vadd.f32 1e-05, %v78_v41  ;;  %v81_v46 = vadd.f32 1e-05, %v79_v43 }
  0xc2   :  { %148 = vrcp.f32 %v83_v40 }
  0xcc   :  { %v149_v44 = vpop.eup %148 }
  0xcd   :  { %v86_v45 = vmul.f32 %v149_v44, %v80_v42  ;;  %v87_v47 = vmul.f32 %v149_v44, %v81_v46 }
  0xcf   :  { %88 = vxpose.xlu1.b32.start [1/2] (short) %v86_v45, 128 }
  0xd3   :  { %89 = vxpose.xlu1.b32.end [2/2] (short) %v87_v47, 128 }
 0x14f   :  { %v104_v48 = vpop.trf.xlu1 }
 0x150   :  { %121 = vst.msk [vmem:[%s273_s1] sm:$0xff] %vm120_vm0, %v104_v48 }
 0x153   :  { %v105_v49 = vpop.trf.xlu1 }
 0x154   :  { %122 = vst.msk [vmem:[%s273_s1 + $0x8] sm:$0xff] %vm120_vm0, %v105_v49 }
 0x157   :  { %v106_v50 = vpop.trf.xlu1 }
 0x158   :  { %123 = vst.msk [vmem:[%s273_s1 + $0x10] sm:$0xff] %vm120_vm0, %v106_v50 }
 0x15b   :  { %v107_v51 = vpop.trf.xlu1 }
 0x15c   :  { %124 = vst.msk [vmem:[%s273_s1 + $0x18] sm:$0xff] %vm120_vm0, %v107_v51 }
 0x15f   :  { %v108_v52 = vpop.trf.xlu1 }
 0x160   :  { %125 = vst.msk [vmem:[%s273_s1 + $0x20] sm:$0xff] %vm120_vm0, %v108_v52 }
 0x163   :  { %v109_v53 = vpop.trf.xlu1 }
 0x164   :  { %126 = vst.msk [vmem:[%s273_s1 + $0x28] sm:$0xff] %vm120_vm0, %v109_v53 }
 0x167   :  { %v110_v54 = vpop.trf.xlu1 }
 0x168   :  { %127 = vst.msk [vmem:[%s273_s1 + $0x30] sm:$0xff] %vm120_vm0, %v110_v54 }
 0x16b   :  { %v111_v55 = vpop.trf.xlu1 }
 0x16c   :  { %128 = vst.msk [vmem:[%s273_s1 + $0x38] sm:$0xff] %vm120_vm0, %v111_v55 }
 0x16f   :  { %v112_v56 = vpop.trf.xlu1 }
 0x170   :  { %129 = vst.msk [vmem:[%s273_s1 + $0x40] sm:$0xff] %vm120_vm0, %v112_v56 }
 0x173   :  { %v113_v57 = vpop.trf.xlu1 }
 0x174   :  { %130 = vst.msk [vmem:[%s273_s1 + $0x48] sm:$0xff] %vm120_vm0, %v113_v57 }
 0x177   :  { %v114_v58 = vpop.trf.xlu1 }
 0x178   :  { %131 = vst.msk [vmem:[%s273_s1 + $0x50] sm:$0xff] %vm120_vm0, %v114_v58 }
 0x17b   :  { %v115_v59 = vpop.trf.xlu1 }
 0x17c   :  { %132 = vst.msk [vmem:[%s273_s1 + $0x58] sm:$0xff] %vm120_vm0, %v115_v59 }
 0x17f   :  { %v116_v60 = vpop.trf.xlu1 }
 0x180   :  { %133 = vst.msk [vmem:[%s273_s1 + $0x60] sm:$0xff] %vm120_vm0, %v116_v60 }
 0x183   :  { %v117_v61 = vpop.trf.xlu1 }
 0x184   :  { %134 = vst.msk [vmem:[%s273_s1 + $0x68] sm:$0xff] %vm120_vm0, %v117_v61 }
 0x187   :  { %v118_v62 = vpop.trf.xlu1 }
 0x188   :  { %135 = vst.msk [vmem:[%s273_s1 + $0x70] sm:$0xff] %vm120_vm0, %v118_v62 }
 0x18b   :  { %v119_v63 = vpop.trf.xlu1 }
 0x18c   :  { %136 = vst.msk [vmem:[%s273_s1 + $0x78] sm:$0xff] %vm120_vm0, %v119_v63 }

</bundles_post_ra>
